<compile_context>
chip_gen: v6e
topology: v6e:2x2x1
jax: 0.10.0
libtpu: 0.0.40
codegen_flags: <defaults>
</compile_context>

<pallas_src>
import jax
import jax.numpy as jnp
from jax.experimental import pallas as pl
from jax.experimental.pallas import tpu as pltpu


def mlp_kernel(x_ref, w1_ref, b1_ref, w2_ref, b2_ref, w3_ref, b3_ref, o_ref):
    # Layer 1: (Bp, Dp)bf16 @ (Dp, H1p)bf16 -> f32 acc, bias + ReLU in f32.
    h1 = jnp.dot(x_ref[...], w1_ref[...], preferred_element_type=jnp.float32)
    h1 = jnp.maximum(h1 + b1_ref[...], 0.0)
    # Layer 2: bf16 MXU path with f32 accumulation.
    h2 = jnp.dot(h1.astype(jnp.bfloat16), w2_ref[...],
                 preferred_element_type=jnp.float32)
    h2 = jnp.maximum(h2 + b2_ref[...], 0.0)
    # Layer 3: logits, no activation. Output block is lane-dense (padded to 128).
    out = jnp.dot(h2.astype(jnp.bfloat16), w3_ref[...],
                  preferred_element_type=jnp.float32)
    o_ref[...] = (out + b3_ref[...]).astype(o_ref.dtype)


def _round_up(n, m):
    return ((n + m - 1) // m) * m


def mlp_forward(image, params):
    """image: (B, H, W) float32. params: (w1,b1,w2,b2,w3,b3) with W as (in, out).
    Returns logits (B, out_dim) float32."""
    w1, b1, w2, b2, w3, b3 = params
    B = image.shape[0]
    x = image.reshape(B, -1).astype(jnp.float32)   # same as PyTorch reshape(B, -1)
    D = x.shape[1]
    H1, H2, O = w1.shape[1], w2.shape[1], w3.shape[1]

    # TPU-friendly padded sizes: sublane multiple of 8 for batch, lane multiple
    # of 128 for every feature dim (lane-dense stores + full MXU tiles).
    Bp = _round_up(max(B, 8), 8)
    Dp = _round_up(D, 128)
    H1p = _round_up(H1, 128)
    H2p = _round_up(H2, 128)
    Op = _round_up(O, 128)

    def pad2(a, rows, cols, dtype):
        out = jnp.zeros((rows, cols), dtype)
        return out.at[: a.shape[0], : a.shape[1]].set(a.astype(dtype))

    # bf16 operands for the MXU, f32 biases for the VPU add/ReLU path.
    x_p = pad2(x, Bp, Dp, jnp.bfloat16)
    w1_p = pad2(w1, Dp, H1p, jnp.bfloat16)
    w2_p = pad2(w2, H1p, H2p, jnp.bfloat16)
    w3_p = pad2(w3, H2p, Op, jnp.bfloat16)
    b1_p = pad2(b1, 1, H1p, jnp.float32)
    b2_p = pad2(b2, 1, H2p, jnp.float32)
    b3_p = pad2(b3, 1, Op, jnp.float32)

    flops = 2 * Bp * (Dp * H1p + H1p * H2p + H2p * Op)
    bytes_accessed = (
        2 * (x_p.size + w1_p.size + w2_p.size + w3_p.size)        # bf16 inputs
        + 4 * (b1_p.size + b2_p.size + b3_p.size)                 # f32 biases
        + 4 * Bp * Op                                             # f32 output
    )

    # Single grid point: every operand is one full-array block (full-extent
    # blocks are exempt from the (8,128) divisibility rule, and all padded dims
    # are lane/sublane aligned anyway).
    full = lambda a: pl.BlockSpec(a.shape, lambda: (0,) * a.ndim)

    out_p = pl.pallas_call(
        mlp_kernel,
        out_shape=jax.ShapeDtypeStruct((Bp, Op), jnp.float32),
        grid_spec=pltpu.PrefetchScalarGridSpec(
            num_scalar_prefetch=0,
            grid=(),
            in_specs=[full(x_p), full(w1_p), full(b1_p), full(w2_p), full(b2_p),
                      full(w3_p), full(b3_p)],
            out_specs=pl.BlockSpec((Bp, Op), lambda: (0, 0)),
        ),
        cost_estimate=pl.CostEstimate(
            flops=flops, transcendentals=0, bytes_accessed=bytes_accessed),
    )(x_p, w1_p, b1_p, w2_p, b2_p, w3_p, b3_p)

    # Slice the sublane/lane padding back off.
    return out_p[:B, :O]


def init_linear(key, fan_in, fan_out):
    """Deterministic init mimicking nn.Linear default (uniform +/- 1/sqrt(fan_in)).
    Weights stored as (in_features, out_features), i.e. transposed vs PyTorch."""
    kw, kb = jax.random.split(key)
    bound = 1.0 / jnp.sqrt(fan_in)
    w = jax.random.uniform(kw, (fan_in, fan_out), jnp.float32, -bound, bound)
    b = jax.random.uniform(kb, (1, fan_out), jnp.float32, -bound, bound)
    return w, b


if __name__ == "__main__":
    # Config: image (B=2, H=16, W=16) -> in_dim=256, hidden1=32, hidden2=32, out_dim=10
    B, H, W = 2, 16, 16
    in_dim = H * W
    hidden1, hidden2, out_dim = 32, 32, 10

    key = jax.random.PRNGKey(0)
    k_img, k1, k2, k3 = jax.random.split(key, 4)

    image = jax.random.normal(k_img, (B, H, W), jnp.float32)
    w1, b1 = init_linear(k1, in_dim, hidden1)
    w2, b2 = init_linear(k2, hidden1, hidden2)
    w3, b3 = init_linear(k3, hidden2, out_dim)
    params = (w1, b1, w2, b2, w3, b3)

    mlp_fn = jax.jit(mlp_forward)
    logits = jax.block_until_ready(mlp_fn(image, params))

    # Pure-JAX f32 reference (same math). Tolerance loosened because the kernel
    # runs the matmuls in bf16 (f32 accumulation).
    x = image.reshape(B, -1)
    ref = jnp.maximum(x @ w1 + b1, 0.0)
    ref = jnp.maximum(ref @ w2 + b2, 0.0)
    ref = ref @ w3 + b3
    assert logits.shape == (B, out_dim)
    assert jnp.allclose(logits, ref, atol=2e-2), "mismatch vs f32 reference"

    print("KERNEL_OK")
</pallas_src>

<mosaic_0001>
module attributes {stable_mosaic.version = 11 : i64} {
  func.func @mlp_kernel(%arg0: memref<8x256xbf16, #tpu.memory_space<vmem>>, %arg1: memref<256x128xbf16, #tpu.memory_space<vmem>>, %arg2: memref<1x128xf32, #tpu.memory_space<vmem>>, %arg3: memref<128x128xbf16, #tpu.memory_space<vmem>>, %arg4: memref<1x128xf32, #tpu.memory_space<vmem>>, %arg5: memref<128x128xbf16, #tpu.memory_space<vmem>>, %arg6: memref<1x128xf32, #tpu.memory_space<vmem>>, %arg7: memref<8x128xf32, #tpu.memory_space<vmem>>) attributes {dimension_semantics = [], scalar_prefetch = 0 : i64, scratch_operands = 0 : i64, tpu.core_type = #tpu.core_type<tc>} {
    %c0 = arith.constant 0 : index
    %c0_0 = arith.constant 0 : index
    %0 = vector.load %arg0[%c0, %c0_0] : memref<8x256xbf16, #tpu.memory_space<vmem>>, vector<8x256xbf16>
    %c0_1 = arith.constant 0 : index
    %c0_2 = arith.constant 0 : index
    %1 = vector.load %arg1[%c0_1, %c0_2] : memref<256x128xbf16, #tpu.memory_space<vmem>>, vector<256x128xbf16>
    %cst = arith.constant dense<0.000000e+00> : vector<8x128xf32>
    %2 = tpu.matmul %0, %1, %cst {dimension_numbers = #tpu.dot_dimension_numbers<[1], [0], [0], [1], [0, 0, 1, 1], [], []>} : vector<8x256xbf16>, vector<256x128xbf16>, vector<8x128xf32> -> vector<8x128xf32>
    %c0_3 = arith.constant 0 : index
    %c0_4 = arith.constant 0 : index
    %3 = vector.load %arg2[%c0_3, %c0_4] : memref<1x128xf32, #tpu.memory_space<vmem>>, vector<1x128xf32>
    %4 = vector.broadcast %3 : vector<1x128xf32> to vector<8x128xf32>
    %5 = arith.addf %2, %4 : vector<8x128xf32>
    %cst_5 = arith.constant 0.000000e+00 : f32
    %6 = vector.broadcast %cst_5 : f32 to vector<8x128xf32>
    %7 = arith.maximumf %5, %6 : vector<8x128xf32>
    %8 = arith.truncf %7 : vector<8x128xf32> to vector<8x128xbf16>
    %c0_6 = arith.constant 0 : index
    %c0_7 = arith.constant 0 : index
    %9 = vector.load %arg3[%c0_6, %c0_7] : memref<128x128xbf16, #tpu.memory_space<vmem>>, vector<128x128xbf16>
    %cst_8 = arith.constant dense<0.000000e+00> : vector<8x128xf32>
    %10 = tpu.matmul %8, %9, %cst_8 {dimension_numbers = #tpu.dot_dimension_numbers<[1], [0], [0], [1], [0, 0, 1, 1], [], []>} : vector<8x128xbf16>, vector<128x128xbf16>, vector<8x128xf32> -> vector<8x128xf32>
    %c0_9 = arith.constant 0 : index
    %c0_10 = arith.constant 0 : index
    %11 = vector.load %arg4[%c0_9, %c0_10] : memref<1x128xf32, #tpu.memory_space<vmem>>, vector<1x128xf32>
    %12 = vector.broadcast %11 : vector<1x128xf32> to vector<8x128xf32>
    %13 = arith.addf %10, %12 : vector<8x128xf32>
    %cst_11 = arith.constant 0.000000e+00 : f32
    %14 = vector.broadcast %cst_11 : f32 to vector<8x128xf32>
    %15 = arith.maximumf %13, %14 : vector<8x128xf32>
    %16 = arith.truncf %15 : vector<8x128xf32> to vector<8x128xbf16>
    %c0_12 = arith.constant 0 : index
    %c0_13 = arith.constant 0 : index
    %17 = vector.load %arg5[%c0_12, %c0_13] : memref<128x128xbf16, #tpu.memory_space<vmem>>, vector<128x128xbf16>
    %cst_14 = arith.constant dense<0.000000e+00> : vector<8x128xf32>
    %18 = tpu.matmul %16, %17, %cst_14 {dimension_numbers = #tpu.dot_dimension_numbers<[1], [0], [0], [1], [0, 0, 1, 1], [], []>} : vector<8x128xbf16>, vector<128x128xbf16>, vector<8x128xf32> -> vector<8x128xf32>
    %c0_15 = arith.constant 0 : index
    %c0_16 = arith.constant 0 : index
    %19 = vector.load %arg6[%c0_15, %c0_16] : memref<1x128xf32, #tpu.memory_space<vmem>>, vector<1x128xf32>
    %20 = vector.broadcast %19 : vector<1x128xf32> to vector<8x128xf32>
    %21 = arith.addf %18, %20 : vector<8x128xf32>
    %c0_17 = arith.constant 0 : index
    %c0_18 = arith.constant 0 : index
    %22 = vector.load %arg7[%c0_17, %c0_18] : memref<8x128xf32, #tpu.memory_space<vmem>>, vector<8x128xf32>
    tpu.vector_store %arg7[%c0_17, %c0_18], %21 {strides = array<i32>} : memref<8x128xf32, #tpu.memory_space<vmem>>, vector<8x128xf32>,
    return
  }
}

</mosaic_0001>

<bundles_post_ra>
// kernel: mlp_forward.1
= control target key start
LH: loop header
LB: loop body
LE: loop exit
PB: predicated region body
PF: predicated region fallthrough
CT: control target
= control target key end

     0   :  { %v594_v1 = vmov 0.0   ;;  %vm595_vm0 = vmmov 0   ;;  %s765_s1 = inlined_call_operand.vmem [shape: bf16[256,128], index: 1, kind: input, shape index: {}]   ;;  %s766_s0 = inlined_call_operand.vmem [shape: bf16[8,256], index: 0, kind: input, shape index: {}]   ;;  %s767_s3 = inlined_call_operand.vmem [shape: bf16[128,128], index: 3, kind: input, shape index: {}]   ;;  %s768_s5 = inlined_call_operand.vmem [shape: bf16[128,128], index: 5, kind: input, shape index: {}]   ;;  %s769_s2 = inlined_call_operand.vmem [shape: f32[1,128], index: 2, kind: input, shape index: {}]   ;;  %s770_s4 = inlined_call_operand.vmem [shape: f32[1,128], index: 4, kind: input, shape index: {}]   ;;  %s771_s6 = inlined_call_operand.vmem [shape: f32[1,128], index: 6, kind: input, shape index: {}]   ;;  %s772_s7 = inlined_call_operand.vmem [shape: f32[8,128], index: 7, kind: output, shape index: {}]  }
   0x1   :  { %v560_v0 = vld [vmem:[%s765_s1 + $0x78] sm:$0xff]   ;;  %518 = vmatprep.subr.bf16.mxu1 %v594_v1  ;;  %v562_v3 = vld [vmem:[%s765_s1 + $0x70] sm:$0xff]   ;;  %v564_v5 = vld [vmem:[%s765_s1 + $0x68] sm:$0xff]   ;;  %534 = vmatprep.mubr.msk.bf16.mxu1 %vm595_vm0, %v594_v1 }
   0x2   :  { %v561_v2 = vld [vmem:[%s765_s1 + $0x38] sm:$0xff]   ;;  %478 = vmatprep.subr.bf16.mxu0 %v560_v0  ;;  %v563_v4 = vld [vmem:[%s765_s1 + $0x30] sm:$0xff]   ;;  %v565_v6 = vld [vmem:[%s765_s1 + $0x28] sm:$0xff]  }
   0x3   :  { %479 = vmatpush3.bf16.msra.mxu0 %v561_v2  ;;  %v566_v7 = vld [vmem:[%s765_s1 + $0x60] sm:$0xff]   ;;  %v568_v9 = vld [vmem:[%s765_s1 + $0x58] sm:$0xff]   ;;  %v570_v11 = vld [vmem:[%s765_s1 + $0x50] sm:$0xff]  }
   0x4   :  { %480 = vmatprep.subr.bf16.mxu0 %v562_v3  ;;  %v567_v8 = vld [vmem:[%s765_s1 + $0x20] sm:$0xff]   ;;  %v569_v10 = vld [vmem:[%s765_s1 + $0x18] sm:$0xff]   ;;  %v571_v15 = vld [vmem:[%s765_s1 + $0x10] sm:$0xff]  }
   0x5   :  { %v27_v12 = vld [vmem:[%s766_s0] sm:$0xff]  ;;  %v578_v14 = vld [vmem:[%s767_s3 + $0x38] sm:$0xff]   ;;  %v572_v16 = vld [vmem:[%s765_s1 + $0x48] sm:$0xff]  }
   0x6   :  { %v443_v13 = vcombine.high %v27_v12, %v27_v12  ;;  %519 = vmatpush3.bf16.msra.mxu1 %v578_v14  ;;  %v579_v17 = vld [vmem:[%s767_s3 + $0x30] sm:$0xff]   ;;  %v573_v18 = vld [vmem:[%s765_s1 + $0x8] sm:$0xff]   ;;  %v574_v19 = vld [vmem:[%s765_s1 + $0x40] sm:$0xff]   ;;  %v442_v23 = vcombine.low %v27_v12, %v27_v12 }
   0x7   :  { %481 = vmatpush3.bf16.msra.mxu0 %v563_v4  ;;  %520 = vmatprep.subr.bf16.mxu1 %v594_v1  ;;  %v580_v20 = vld [vmem:[%s767_s3 + $0x28] sm:$0xff]   ;;  %v575_v21 = vld [vmem:[%s765_s1] sm:$0xff]   ;;  %v582_v24 = vld [vmem:[%s767_s3 + $0x18] sm:$0xff]  }
   0x8   :  { %482 = vmatprep.subr.bf16.mxu0 %v564_v5  ;;  %202 = vmatprep.mubr.bf16.mxu0 %v443_v13  ;;  %v581_v22 = vld [vmem:[%s767_s3 + $0x20] sm:$0xff]   ;;  %v583_v25 = vld [vmem:[%s767_s3 + $0x10] sm:$0xff]   ;;  %v584_v26 = vld [vmem:[%s767_s3 + $0x8] sm:$0xff]  }
   0x9   :  { %v585_v27 = vld [vmem:[%s767_s3] sm:$0xff]   ;;  %v586_v28 = vld [vmem:[%s768_s5 + $0x38] sm:$0xff]   ;;  %v587_v29 = vld [vmem:[%s768_s5 + $0x30] sm:$0xff]  }
   0xa   :  { %521 = vmatpush3.bf16.msra.mxu1 %v579_v17  ;;  %v588_v30 = vld [vmem:[%s768_s5 + $0x28] sm:$0xff]   ;;  %v589_v31 = vld [vmem:[%s768_s5 + $0x20] sm:$0xff]   ;;  %v590_v32 = vld [vmem:[%s768_s5 + $0x18] sm:$0xff]  }
   0xb   :  { %483 = vmatpush3.bf16.msra.mxu0 %v565_v6  ;;  %522 = vmatprep.subr.bf16.mxu1 %v594_v1  ;;  %v591_v33 = vld [vmem:[%s768_s5 + $0x10] sm:$0xff]   ;;  %v441_v35 = vld [vmem:[%s769_s2] ss:$0 sm:$0xff]  ;;  %v592_v43 = vld [vmem:[%s768_s5 + $0x8] sm:$0xff]  }
   0xc   :  { %484 = vmatprep.subr.bf16.mxu0 %v566_v7  ;;  %v593_v44 = vld [vmem:[%s768_s5] sm:$0xff]  }
   0xd   :  { %v460_v45 = vld [vmem:[%s770_s4] ss:$0 sm:$0xff] }
   0xe   :  { %523 = vmatpush3.bf16.msra.mxu1 %v580_v20  ;;  %v469_v53 = vld [vmem:[%s771_s6] ss:$0 sm:$0xff] }
   0xf   :  { %485 = vmatpush3.bf16.msra.mxu0 %v567_v8  ;;  %524 = vmatprep.subr.bf16.mxu1 %v594_v1 }
  0x10   :  { %486 = vmatprep.subr.bf16.mxu0 %v568_v9 }
  0x12   :  { %525 = vmatpush3.bf16.msra.mxu1 %v581_v22 }
  0x13   :  { %487 = vmatpush3.bf16.msra.mxu0 %v569_v10  ;;  %526 = vmatprep.subr.bf16.mxu1 %v594_v1 }
  0x14   :  { %488 = vmatprep.subr.bf16.mxu0 %v570_v11 }
  0x16   :  { %527 = vmatpush3.bf16.msra.mxu1 %v582_v24 }
  0x17   :  { %489 = vmatpush3.bf16.msra.mxu0 %v571_v15  ;;  %528 = vmatprep.subr.bf16.mxu1 %v594_v1 }
  0x18   :  { %490 = vmatprep.subr.bf16.mxu0 %v572_v16 }
  0x1a   :  { %529 = vmatpush3.bf16.msra.mxu1 %v583_v25 }
  0x1b   :  { %491 = vmatpush3.bf16.msra.mxu0 %v573_v18  ;;  %530 = vmatprep.subr.bf16.mxu1 %v594_v1 }
  0x1c   :  { %492 = vmatprep.subr.bf16.mxu0 %v574_v19 }
  0x1e   :  { %531 = vmatpush3.bf16.msra.mxu1 %v584_v26 }
  0x1f   :  { %493 = vmatpush3.bf16.msra.mxu0 %v575_v21  ;;  %532 = vmatprep.subr.bf16.mxu1 %v594_v1 }
  0x20   :  { %538 = vmatprep.subr.bf16.mxu0 %v594_v1 }
  0x22   :  { %203 = vmatmul.mubr.bf16.vlgmr.msra.gmra.mxu0 %v442_v23  ;;  %533 = vmatpush3.bf16.msra.mxu1 %v585_v27 }
  0x23   :  { %554 = vmatprep.mubr.msk.bf16.mxu0 %vm595_vm0, %v594_v1  ;;  %539 = vmatpush3.bf16.msra.mxu0 %v586_v28 }
  0x24   :  { %540 = vmatprep.subr.bf16.mxu0 %v594_v1 }
  0x27   :  { %541 = vmatpush3.bf16.msra.mxu0 %v587_v29 }
  0x28   :  { %542 = vmatprep.subr.bf16.mxu0 %v594_v1 }
  0x2b   :  { %543 = vmatpush3.bf16.msra.mxu0 %v588_v30 }
  0x2c   :  { %544 = vmatprep.subr.bf16.mxu0 %v594_v1 }
  0x2f   :  { %545 = vmatpush3.bf16.msra.mxu0 %v589_v31 }
  0x30   :  { %546 = vmatprep.subr.bf16.mxu0 %v594_v1 }
  0x33   :  { %547 = vmatpush3.bf16.msra.mxu0 %v590_v32 }
  0x34   :  { %548 = vmatprep.subr.bf16.mxu0 %v594_v1 }
  0x37   :  { %549 = vmatpush3.bf16.msra.mxu0 %v591_v33 }
  0x38   :  { %550 = vmatprep.subr.bf16.mxu0 %v594_v1 }
  0x3b   :  { %551 = vmatpush3.bf16.msra.mxu0 %v592_v43 }
  0x3c   :  { %552 = vmatprep.subr.bf16.mxu0 %v594_v1 }
  0x3f   :  { %553 = vmatpush3.bf16.msra.mxu0 %v593_v44 }
  0xe2   :  { %v494_v34 = vpop.f32.mrf.mxu0 }
  0xe4   :  { %v495_v36 = vpop.f32.mrf.mxu0 }
  0xe5   :  { %v496_v37 = vadd.f32 %v495_v36, %v494_v34 }
  0xe6   :  { %v497_v38 = vpop.f32.mrf.mxu0 }
  0xe7   :  { %v205_v39 = vadd.f32 %v496_v37, %v441_v35 }
  0xe8   :  { %v498_v40 = vpop.f32.mrf.mxu0 }
  0xe9   :  { %v210_v41 = vmax.f32 %v205_v39, 0.0 }
  0xeb   :  { %v211_v42 = vpack.c.bf16 %v210_v41, %v210_v41 }
  0xed   :  { %535 = vmatmul.mubr.bf16.vlgmr.msra.gmra.mxu1 %v211_v42 }
 0x1ad   :  { %v317_v46 = vpop.f32.mrf.mxu1 }
 0x1ae   :  { %v318_v47 = vadd.f32 %v460_v45, %v317_v46 }
 0x1af   :  { %v536_v48 = vpop.f32.mrf.mxu1 }
 0x1b0   :  { %v323_v49 = vmax.f32 %v318_v47, 0.0 }
 0x1b1   :  { %v320_v50 = vpop.f32.mrf.mxu1 }
 0x1b2   :  { %v324_v51 = vpack.c.bf16 %v323_v49, %v323_v49 }
 0x1b3   :  { %v537_v52 = vpop.f32.mrf.mxu1 }
 0x1b4   :  { %555 = vmatmul.mubr.bf16.vlgmr.msra.gmra.mxu0 %v324_v51 }
 0x274   :  { %v430_v54 = vpop.f32.mrf.mxu0 }
 0x275   :  { %v431_v55 = vadd.f32 %v469_v53, %v430_v54 }
 0x276   :  { %v556_v56 = vpop.f32.mrf.mxu0 }
 0x277   :  { %436 = vst [vmem:[%s772_s7] sm:$0xff] %v431_v55 }
 0x278   :  { %v433_v57 = vpop.f32.mrf.mxu0 }
 0x27a   :  { %v557_v58 = vpop.f32.mrf.mxu0 }

</bundles_post_ra>
